<compile_context>
chip_gen: v7x
topology: tpu7x:2x2x1
jax: 0.10.0
libtpu: 0.0.40
codegen_flags: <defaults>
</compile_context>

<pallas_src>
import functools

import jax
import jax.numpy as jnp
from jax.experimental import pallas as pl
from jax.experimental.pallas import tpu as pltpu


def _round_up(x, m):
    return (x + m - 1) // m * m


def dueling_q_kernel(x_ref, w1_ref, w2_ref, w3_ref, b_ref, o_ref, *, H, A, off2, off3):
    # Lane-aligned packed biases (f32): segments start at lanes 0, off2, off3
    # (all multiples of 128), so these are aligned sub-views.
    b1 = b_ref[:, 0:H]                      # (1, H)
    b2 = b_ref[:, off2:off2 + 2 * H]        # (1, 2H)
    b3 = b_ref[:, off3:off3 + A]            # (1, A)

    # Feature layer: Linear(S, H) + ReLU.  bf16 operands, f32 MXU accumulation,
    # f32 epilogue (v5e VPU has no bf16).
    feat = jnp.dot(x_ref[...], w1_ref[...],
                   preferred_element_type=jnp.float32) + b1
    feat = jnp.maximum(feat, 0.0)

    # Fused hidden layer of both heads: Linear(H, 2H) + ReLU -> [hv | ha]
    h = jnp.dot(feat.astype(jnp.bfloat16), w2_ref[...],
                preferred_element_type=jnp.float32) + b2
    h = jnp.maximum(h, 0.0)

    # Fused final layer: [hv | ha] @ W3c + b3c == V + A == Q   (tb, A)
    q = jnp.dot(h.astype(jnp.bfloat16), w3_ref[...],
                preferred_element_type=jnp.float32) + b3
    o_ref[...] = q.astype(o_ref.dtype)


def fuse_params(params):
    """Pre-fuse the dueling heads ONCE (amortized over all forward calls)."""
    w1 = params["w1"]
    S, H = w1.shape
    A = params["w3a"].shape[1]

    # [value | advantage] hidden layer, and final layer with the single value
    # column replicated across all A action columns so the last dot yields Q.
    w2 = jnp.concatenate([params["w2v"], params["w2a"]], axis=1)              # (H, 2H)
    w3 = jnp.concatenate(
        [jnp.broadcast_to(params["w3v"], (H, A)), params["w3a"]], axis=0)     # (2H, A)

    # Lane-aligned packed biases: [b1 | pad | b2 | pad | b3c | pad]
    off2 = _round_up(H, 128)
    off3 = off2 + _round_up(2 * H, 128)
    total = off3 + _round_up(A, 128)
    b_packed = jnp.zeros((1, total), jnp.float32)
    b_packed = b_packed.at[:, 0:H].set(params["b1"])
    b_packed = b_packed.at[:, off2:off2 + 2 * H].set(
        jnp.concatenate([params["b2v"], params["b2a"]], axis=1))
    b_packed = b_packed.at[:, off3:off3 + A].set(params["b3v"] + params["b3a"])

    return dict(
        w1=w1.astype(jnp.bfloat16),
        w2f=w2.astype(jnp.bfloat16),
        w3f=w3.astype(jnp.bfloat16),
        b_packed=b_packed,
        S=S, H=H, A=A, off2=off2, off3=off3,
    )


def dueling_q_forward(state, fused, tb=None):
    """state: (B, S) float32. fused: output of fuse_params(params)."""
    B, S = state.shape
    H, A = fused["H"], fused["A"]
    off2, off3 = fused["off2"], fused["off3"]
    btot = fused["b_packed"].shape[1]

    # Batch tile: multiple of 16 (bf16 sublane packing), cap 1024 for
    # HBM-roofline-friendly DMAs. No host-side padding: Pallas clamps the
    # ragged edge block; rows are independent so this is safe.
    if tb is None:
        tb = min(1024, _round_up(B, 16))
    grid = (pl.cdiv(B, tb),)

    # Host-side bf16 cast halves x HBM->VMEM traffic (dominant at large B).
    x = state.astype(jnp.bfloat16)

    kernel = functools.partial(dueling_q_kernel, H=H, A=A, off2=off2, off3=off3)

    return pl.pallas_call(
        kernel,
        out_shape=jax.ShapeDtypeStruct((B, A), jnp.float32),
        grid_spec=pltpu.PrefetchScalarGridSpec(
            num_scalar_prefetch=0,
            grid=grid,
            in_specs=[
                pl.BlockSpec((tb, S), lambda i: (i, 0)),         # x: tiled on batch
                pl.BlockSpec((S, H), lambda i: (0, 0)),          # w1: VMEM-resident
                pl.BlockSpec((H, 2 * H), lambda i: (0, 0)),      # fused W2
                pl.BlockSpec((2 * H, A), lambda i: (0, 0)),      # fused W3c
                pl.BlockSpec((1, btot), lambda i: (0, 0)),       # packed biases
            ],
            out_specs=pl.BlockSpec((tb, A), lambda i: (i, 0)),
        ),
        compiler_params=pltpu.CompilerParams(
            dimension_semantics=("parallel",)),                  # megacore on v7x
    )(x, fused["w1"], fused["w2f"], fused["w3f"], fused["b_packed"])


def init_params(key, state_size, hidden_size, action_size):
    """PyTorch nn.Linear-style init U(-1/sqrt(fan_in), 1/sqrt(fan_in)).
    Weights stored transposed vs nn.Linear: shape (in, out)."""
    def linear(key, fan_in, fan_out):
        kw, kb = jax.random.split(key)
        bound = 1.0 / jnp.sqrt(float(fan_in))
        w = jax.random.uniform(kw, (fan_in, fan_out), jnp.float32, -bound, bound)
        b = jax.random.uniform(kb, (1, fan_out), jnp.float32, -bound, bound)
        return w, b

    keys = jax.random.split(key, 5)
    w1, b1 = linear(keys[0], state_size, hidden_size)
    w2v, b2v = linear(keys[1], hidden_size, hidden_size)
    w3v, b3v = linear(keys[2], hidden_size, 1)
    w2a, b2a = linear(keys[3], hidden_size, hidden_size)
    w3a, b3a = linear(keys[4], hidden_size, action_size)
    return dict(w1=w1, b1=b1, w2v=w2v, b2v=b2v, w3v=w3v, b3v=b3v,
                w2a=w2a, b2a=b2a, w3a=w3a, b3a=b3a)


def reference_forward(state, p):
    # Faithful (un-fused, f32) reference matching the PyTorch module:
    # Q = value_head(feat) + advantage_head(feat)   (no advantage-mean subtraction)
    relu = lambda x: jnp.maximum(x, 0.0)
    feat = relu(state @ p["w1"] + p["b1"])
    v = relu(feat @ p["w2v"] + p["b2v"]) @ p["w3v"] + p["b3v"]
    a = relu(feat @ p["w2a"] + p["b2a"]) @ p["w3a"] + p["b3a"]
    return v + a


if __name__ == "__main__":
    B, S, H, A = 8, 16, 32, 4  # batch, state_size, hidden_size, action_size

    key = jax.random.PRNGKey(0)
    k_params, k_state = jax.random.split(key)
    params = init_params(k_params, S, H, A)
    state = jax.random.normal(k_state, (B, S), jnp.float32)

    fused = fuse_params(params)          # one-time head fusion + bf16 weight cast
    q = dueling_q_forward(state, fused)
    q = jax.block_until_ready(q)

    q_ref = reference_forward(state, params)
    assert q.shape == (B, A)
    # bf16 matmul operands + fused accumulation order -> relaxed tolerance.
    assert jnp.allclose(q, q_ref, atol=5e-2, rtol=5e-2), "mismatch vs JAX reference"

    print("KERNEL_OK")
</pallas_src>

<mosaic_0001>
module attributes {stable_mosaic.version = 11 : i64} {
  func.func @dueling_q_kernel(%arg0: i32, %arg1: memref<16x16xbf16, #tpu.memory_space<vmem>>, %arg2: memref<16x32xbf16, #tpu.memory_space<vmem>>, %arg3: memref<32x64xbf16, #tpu.memory_space<vmem>>, %arg4: memref<64x4xbf16, #tpu.memory_space<vmem>>, %arg5: memref<1x384xf32, #tpu.memory_space<vmem>>, %arg6: memref<16x4xf32, #tpu.memory_space<vmem>>) attributes {dimension_semantics = [#tpu.dimension_semantics<parallel>], iteration_bounds = array<i64: 1>, scalar_prefetch = 0 : i64, scratch_operands = 0 : i64, tpu.core_type = #tpu.core_type<tc>, window_params = [{transform_indices = @transform_0, window_bounds = array<i64: 16, 16>}, {pipeline_mode = #tpu.pipeline_mode<synchronous>, transform_indices = @transform_1, window_bounds = array<i64: 16, 32>}, {pipeline_mode = #tpu.pipeline_mode<synchronous>, transform_indices = @transform_2, window_bounds = array<i64: 32, 64>}, {pipeline_mode = #tpu.pipeline_mode<synchronous>, transform_indices = @transform_3, window_bounds = array<i64: 64, 4>}, {pipeline_mode = #tpu.pipeline_mode<synchronous>, transform_indices = @transform_4, window_bounds = array<i64: 1, 384>}, {transform_indices = @transform_5, window_bounds = array<i64: 16, 4>}]} {
    %c0 = arith.constant 0 : index
    %c0_0 = arith.constant 0 : index
    %0 = vector.load %arg5[%c0, %c0_0] : memref<1x384xf32, #tpu.memory_space<vmem>>, vector<1x32xf32>
    %c0_1 = arith.constant 0 : index
    %c128 = arith.constant 128 : index
    %1 = vector.load %arg5[%c0_1, %c128] : memref<1x384xf32, #tpu.memory_space<vmem>>, vector<1x64xf32>
    %c0_2 = arith.constant 0 : index
    %c256 = arith.constant 256 : index
    %2 = vector.load %arg5[%c0_2, %c256] : memref<1x384xf32, #tpu.memory_space<vmem>>, vector<1x4xf32>
    %c0_3 = arith.constant 0 : index
    %c0_4 = arith.constant 0 : index
    %3 = vector.load %arg1[%c0_3, %c0_4] : memref<16x16xbf16, #tpu.memory_space<vmem>>, vector<16x16xbf16>
    %c0_5 = arith.constant 0 : index
    %c0_6 = arith.constant 0 : index
    %4 = vector.load %arg2[%c0_5, %c0_6] : memref<16x32xbf16, #tpu.memory_space<vmem>>, vector<16x32xbf16>
    %cst = arith.constant dense<0.000000e+00> : vector<16x32xf32>
    %5 = tpu.matmul %3, %4, %cst {dimension_numbers = #tpu.dot_dimension_numbers<[1], [0], [0], [1], [0, 0, 1, 1], [], []>} : vector<16x16xbf16>, vector<16x32xbf16>, vector<16x32xf32> -> vector<16x32xf32>
    %6 = vector.broadcast %0 : vector<1x32xf32> to vector<16x32xf32>
    %7 = arith.addf %5, %6 : vector<16x32xf32>
    %cst_7 = arith.constant 0.000000e+00 : f32
    %8 = vector.broadcast %cst_7 : f32 to vector<16x32xf32>
    %9 = arith.maximumf %7, %8 : vector<16x32xf32>
    %10 = arith.truncf %9 : vector<16x32xf32> to vector<16x32xbf16>
    %c0_8 = arith.constant 0 : index
    %c0_9 = arith.constant 0 : index
    %11 = vector.load %arg3[%c0_8, %c0_9] : memref<32x64xbf16, #tpu.memory_space<vmem>>, vector<32x64xbf16>
    %cst_10 = arith.constant dense<0.000000e+00> : vector<16x64xf32>
    %12 = tpu.matmul %10, %11, %cst_10 {dimension_numbers = #tpu.dot_dimension_numbers<[1], [0], [0], [1], [0, 0, 1, 1], [], []>} : vector<16x32xbf16>, vector<32x64xbf16>, vector<16x64xf32> -> vector<16x64xf32>
    %13 = vector.broadcast %1 : vector<1x64xf32> to vector<16x64xf32>
    %14 = arith.addf %12, %13 : vector<16x64xf32>
    %cst_11 = arith.constant 0.000000e+00 : f32
    %15 = vector.broadcast %cst_11 : f32 to vector<16x64xf32>
    %16 = arith.maximumf %14, %15 : vector<16x64xf32>
    %17 = arith.truncf %16 : vector<16x64xf32> to vector<16x64xbf16>
    %c0_12 = arith.constant 0 : index
    %c0_13 = arith.constant 0 : index
    %18 = vector.load %arg4[%c0_12, %c0_13] : memref<64x4xbf16, #tpu.memory_space<vmem>>, vector<64x4xbf16>
    %cst_14 = arith.constant dense<0.000000e+00> : vector<16x4xf32>
    %19 = tpu.matmul %17, %18, %cst_14 {dimension_numbers = #tpu.dot_dimension_numbers<[1], [0], [0], [1], [0, 0, 1, 1], [], []>} : vector<16x64xbf16>, vector<64x4xbf16>, vector<16x4xf32> -> vector<16x4xf32>
    %20 = vector.broadcast %2 : vector<1x4xf32> to vector<16x4xf32>
    %21 = arith.addf %19, %20 : vector<16x4xf32>
    %c0_15 = arith.constant 0 : index
    %c0_16 = arith.constant 0 : index
    %22 = vector.load %arg6[%c0_15, %c0_16] : memref<16x4xf32, #tpu.memory_space<vmem>>, vector<16x4xf32>
    tpu.vector_store %arg6[%c0_15, %c0_16], %21 {strides = array<i32>} : memref<16x4xf32, #tpu.memory_space<vmem>>, vector<16x4xf32>,
    return
  }
  func.func @transform_0(%arg0: i32) -> (i32, i32) {
    %c0_i32 = arith.constant 0 : i32
    %c0_i32_0 = arith.constant 0 : i32
    return %arg0, %c0_i32 : i32, i32
  }
  func.func @transform_1(%arg0: i32) -> (i32, i32) {
    %c0_i32 = arith.constant 0 : i32
    %c0_i32_0 = arith.constant 0 : i32
    %c0_i32_1 = arith.constant 0 : i32
    return %c0_i32, %c0_i32_0 : i32, i32
  }
  func.func @transform_2(%arg0: i32) -> (i32, i32) {
    %c0_i32 = arith.constant 0 : i32
    %c0_i32_0 = arith.constant 0 : i32
    %c0_i32_1 = arith.constant 0 : i32
    return %c0_i32, %c0_i32_0 : i32, i32
  }
  func.func @transform_3(%arg0: i32) -> (i32, i32) {
    %c0_i32 = arith.constant 0 : i32
    %c0_i32_0 = arith.constant 0 : i32
    %c0_i32_1 = arith.constant 0 : i32
    return %c0_i32, %c0_i32_0 : i32, i32
  }
  func.func @transform_4(%arg0: i32) -> (i32, i32) {
    %c0_i32 = arith.constant 0 : i32
    %c0_i32_0 = arith.constant 0 : i32
    %c0_i32_1 = arith.constant 0 : i32
    return %c0_i32, %c0_i32_0 : i32, i32
  }
  func.func @transform_5(%arg0: i32) -> (i32, i32) {
    %c0_i32 = arith.constant 0 : i32
    %c0_i32_0 = arith.constant 0 : i32
    return %arg0, %c0_i32 : i32, i32
  }
}

</mosaic_0001>

<bundles_post_ra>
// kernel: tpu_custom_call.1
= control target key start
LH: loop header
LB: loop body
LE: loop exit
PB: predicated region body
PF: predicated region fallthrough
CT: control target
= control target key end

     0   :  { %v349_v1 = vmov 0.0   ;;  %vm350_vm0 = vmmov 0   ;;  %vm45_vm1 = vcmask 130048   ;;  %vm115_vm2 = vcmask 261120   ;;  %s417_s0 = inlined_call_operand.vmem [shape: bf16[8,16], index: 0, kind: input, shape index: {}]   ;;  %s418_s1 = inlined_call_operand.vmem [shape: bf16[16,32], index: 1, kind: input, shape index: {}]   ;;  %s419_s2 = inlined_call_operand.vmem [shape: bf16[32,64], index: 2, kind: input, shape index: {}]   ;;  %s420_s3 = inlined_call_operand.vmem [shape: bf16[64,4], index: 3, kind: input, shape index: {}]   ;;  %s421_s4 = inlined_call_operand.vmem [shape: f32[1,384], index: 4, kind: input, shape index: {}]   ;;  %s422_s5 = inlined_call_operand.vmem [shape: f32[8,4], index: 5, kind: output, shape index: {}]  }
   0x1   :  { %v341_v0 = vld [vmem:[%s418_s1] sm:$0xff]   ;;  %313 = vmatprep.subr.bf16.mxu1 %v349_v1  ;;  %327 = vmatprep.subr.bf16.mxu0 %v349_v1  ;;  %v344_v4 = vld [vmem:[%s419_s2 + $0x8] sm:$0xff]   ;;  %v347_v17 = vld [vmem:[%s420_s3 + $0x10] sm:$0xff]   ;;  %vm201_vm3 = vcmask 523264   ;;  %vm246_vm4 = vcmask 31744  }
   0x2   :  { %v342_v2 = vld [vmem:[%s417_s0] sm:$0xff]   ;;  %314 = vmatpush3.bf16.msra.mxu1 %v341_v0  ;;  %315 = vmatprep.mubr.msk.bf16.mxu1 %vm350_vm0, %v349_v1  ;;  %v346_v6 = vld [vmem:[%s420_s3 + $0x8] sm:$0xff]   ;;  %v348_v18 = vld [vmem:[%s420_s3 + $0x18] sm:$0xff]  }
   0x3   :  { %319 = vmatprep.subr.bf16.mxu1 %v349_v1  ;;  %335 = vmatprep.mubr.msk.bf16.mxu0 %vm350_vm0, %v349_v1  ;;  %v343_v3 = vld [vmem:[%s419_s2] sm:$0xff]  }
   0x4   :  { %v345_v5 = vld [vmem:[%s420_s3] sm:$0xff]  }
   0x5   :  { %316 = vmatmul.mubr.msk.bf16.vlgmr.msra.gmra.mrb[0].mxu1 %vm45_vm1, %v342_v2  ;;  %328 = vmatpush3.bf16.msra.mxu0 %v345_v5  ;;  %v289_v7 = vld [vmem:[%s421_s4] ss:$0 sm:$0xff]  ;;  %v293_v19 = vld [vmem:[%s421_s4 + $0x1] ss:$0 sm:$0xff]  ;;  %v297_v29 = vld [vmem:[%s421_s4 + $0x2] ss:$0 sm:$0xff] }
   0x6   :  { %323 = vmatprep.mubr.msk.bf16.mxu1 %vm350_vm0, %v349_v1  ;;  %320 = vmatpush3.bf16.msra.mxu1 %v343_v3 }
   0x7   :  { %321 = vmatprep.subr.bf16.mxu1 %v349_v1  ;;  %329 = vmatprep.subr.bf16.mxu0 %v349_v1 }
   0x9   :  { %330 = vmatpush3.bf16.msra.mxu0 %v346_v6 }
   0xa   :  { %322 = vmatpush3.bf16.msra.mxu1 %v344_v4  ;;  %331 = vmatprep.subr.bf16.mxu0 %v349_v1 }
   0xd   :  { %332 = vmatpush3.bf16.msra.mxu0 %v347_v17 }
   0xe   :  { %333 = vmatprep.subr.bf16.mxu0 %v349_v1 }
  0x11   :  { %334 = vmatpush3.bf16.msra.mxu0 %v348_v18 }
  0xd8   :  { %v83_v8 = vpop.f32.mrb[0].mxu1 }
  0xd9   :  { %v84_v9 = vadd.f32 %v289_v7, %v83_v8  ;;  %v317_v10 = vpop.f32.mrb[1].mxu1 }
  0xda   :  { %v86_v11 = vpop.f32.mrb[2].mxu1 }
  0xdb   :  { %v87_v12 = vadd.f32 %v289_v7, %v86_v11  ;;  %v318_v13 = vpop.f32.mrb[3].mxu1  ;;  %v90_v14 = vmax.f32 %v84_v9, 0.0 }
  0xdd   :  { %v91_v15 = vmax.f32 %v87_v12, 0.0 }
  0xdf   :  { %v92_v16 = vpack.c.bf16 %v91_v15, %v90_v14 }
  0xe1   :  { %324 = vmatmul.mubr.msk.bf16.vlgmr.msra.gmra.mrb[4].mxu1 %vm115_vm2, %v92_v16 }
 0x1b4   :  { %v153_v20 = vpop.f32.mrb[4].mxu1 }
 0x1b5   :  { %v154_v21 = vadd.f32 %v293_v19, %v153_v20  ;;  %v325_v22 = vpop.f32.mrb[5].mxu1 }
 0x1b6   :  { %v156_v23 = vpop.f32.mrb[6].mxu1 }
 0x1b7   :  { %v157_v24 = vadd.f32 %v293_v19, %v156_v23  ;;  %v326_v25 = vpop.f32.mrb[7].mxu1  ;;  %v160_v26 = vmax.f32 %v154_v21, 0.0 }
 0x1b9   :  { %v161_v27 = vmax.f32 %v157_v24, 0.0 }
 0x1bb   :  { %v162_v28 = vpack.c.bf16 %v161_v27, %v160_v26 }
 0x1bd   :  { %336 = vmatmul.mubr.msk.bf16.vlgmr.msra.gmra.mrb[0].mxu0 %vm201_vm3, %v162_v28 }
 0x290   :  { %v239_v30 = vpop.f32.mrb[0].mxu0 }
 0x291   :  { %v240_v31 = vadd.f32 %v297_v29, %v239_v30  ;;  %v337_v32 = vpop.f32.mrb[1].mxu0 }
 0x292   :  { %v242_v33 = vpop.f32.mrb[2].mxu0 }
 0x293   :  { %247 = vst.msk [vmem:[#allocation2] sm:$0xff] %vm246_vm4, %v240_v31  ;;  %v338_v34 = vpop.f32.mrb[3].mxu0 }
 0x29a   :  { %v278_v35 = vld [vmem:[#allocation2] sm:$0xff] }
 0x29b   :  { %279 = vst [vmem:[%s422_s5] sm:$0xff] %v278_v35 }

</bundles_post_ra>
